<compile_context>
chip_gen: v7x
topology: tpu7x:2x2x1
jax: 0.10.0
libtpu: 0.0.40
codegen_flags: <defaults>
</compile_context>

<pallas_src>
import jax
import jax.numpy as jnp
from jax.experimental import pallas as pl
from jax.experimental.pallas import tpu as pltpu


def _round_up(x: int, m: int) -> int:
    return (x + m - 1) // m * m


# MXU pass width on v6e/v7x; multiple of 128 so also lane-dense on v5e.
LANE_ALIGN = 256


def _vmem_limit_bytes() -> int:
    """Raise the scoped VMEM limit above the 16/32 MiB defaults, with headroom."""
    try:
        cap = pltpu.get_tpu_info().vmem_capacity_bytes   # 128 MiB v5e/v6e, 64 MiB v7x
    except Exception:
        cap = 64 * 1024 * 1024
    return int(min(96 * 1024 * 1024, (cap * 3) // 4))


_VMEM_LIMIT = _vmem_limit_bytes()


def _gelu_tanh(x):
    # tanh-approximate GELU; polynomial folded so the VALU does one fewer multiply,
    # tanh itself goes to the EUP slot.
    c1 = 0.7978845608028654            # sqrt(2/pi)
    c2 = 0.7978845608028654 * 0.044715  # sqrt(2/pi) * 0.044715
    x2 = x * x
    t = jnp.tanh(x * (c1 + c2 * x2))
    return 0.5 * x * (1.0 + t)


def prepare_ffn_params(w1, b1, w2, b2, param_dtype=jnp.bfloat16, lane_align=LANE_ALIGN):
    """One-time (init-time) padding + dtype cast of the FFN parameters.

    w1: (dim, hidden), b1: (hidden,), w2: (hidden, dim), b2: (dim,)
    (torch stores Linear weights as (out, in); transpose once at init, not per call)

    Zero-padding is mathematically a no-op: gelu(0 + 0) = 0, and the padded
    hidden rows of W2 / padded output columns contribute zeros that are sliced off.
    """
    dim, hidden = w1.shape
    assert w2.shape == (hidden, dim) and b1.shape == (hidden,) and b2.shape == (dim,)
    hidden_p = _round_up(hidden, lane_align)
    dim_out_p = _round_up(dim, lane_align)
    w1_p = jnp.pad(w1, ((0, 0), (0, hidden_p - hidden))).astype(param_dtype)
    b1_p = jnp.pad(b1, (0, hidden_p - hidden)).reshape(1, hidden_p).astype(jnp.float32)
    w2_p = jnp.pad(w2, ((0, hidden_p - hidden), (0, dim_out_p - dim))).astype(param_dtype)
    b2_p = jnp.pad(b2, (0, dim_out_p - dim)).reshape(1, dim_out_p).astype(jnp.float32)
    return w1_p, b1_p, w2_p, b2_p


# ------------------------------------------------------------------
# Kernel: one M-tile of the fused FFN
#   x_ref : (TILE_M, dim)  f32/bf16     w1_ref : (dim, hidden_p)   bf16
#   b1_ref: (1, hidden_p)  f32          w2_ref : (hidden_p, dim_p) bf16
#   b2_ref: (1, dim_p)     f32          o_ref  : (TILE_M, dim_p)
# ------------------------------------------------------------------
def _ffn_kernel(x_ref, w1_ref, b1_ref, w2_ref, b2_ref, o_ref):
    x = x_ref[...].astype(w1_ref.dtype)            # bf16 operands -> MXU fast path
    h = jnp.dot(x, w1_ref[...], preferred_element_type=jnp.float32)
    h = h + b1_ref[...]                            # f32 bias add
    h = _gelu_tanh(h)                              # f32 elementwise (v5e-safe)
    # Dropout (p = 0.0) is the identity in this forward pass.
    y = jnp.dot(h.astype(w2_ref.dtype), w2_ref[...],
                preferred_element_type=jnp.float32)
    y = y + b2_ref[...]
    o_ref[...] = y.astype(o_ref.dtype)


@jax.jit
def feedforward_forward(x, w1_p, b1_p, w2_p, b2_p):
    """y = Dropout(Linear2(Dropout(GELU(Linear1(x))))), dropout p = 0.0.

    Takes the *pre-padded* bf16/f32 params from `prepare_ffn_params`.
    """
    dim = x.shape[-1]
    hidden_p = w1_p.shape[1]
    dim_out_p = w2_p.shape[1]
    assert w1_p.shape == (dim, hidden_p)
    assert w2_p.shape == (hidden_p, dim_out_p)

    orig_shape = x.shape
    x2d = x.reshape(-1, dim)                       # (M, dim) glue reshape
    m = x2d.shape[0]

    # ---- tile over M; no wrapper-side padding, Pallas masks the ragged tail ----
    tile_m = min(1024, _round_up(m, 8))
    if m > 8 and pl.cdiv(m, tile_m) < 2:
        # Ensure >= 2 M tiles so the "parallel" axis lands on both TensorCores (v7x).
        tile_m = _round_up(pl.cdiv(m, 2), 8)
    grid_m = pl.cdiv(m, tile_m)

    bytes_accessed = (
        m * dim * x.dtype.itemsize                       # x stream
        + w1_p.size * w1_p.dtype.itemsize
        + b1_p.size * b1_p.dtype.itemsize
        + w2_p.size * w2_p.dtype.itemsize
        + b2_p.size * b2_p.dtype.itemsize                # resident weights (read once)
        + m * dim_out_p * x.dtype.itemsize               # output stream
    )
    cost = pl.CostEstimate(
        flops=2 * m * dim * hidden_p + 2 * m * hidden_p * dim_out_p,
        transcendentals=m * hidden_p,
        bytes_accessed=bytes_accessed,
    )

    out_p = pl.pallas_call(
        _ffn_kernel,
        out_shape=jax.ShapeDtypeStruct((m, dim_out_p), x.dtype),
        grid_spec=pl.GridSpec(
            grid=(grid_m,),
            in_specs=[
                # streamed x tile (double-buffered by default)
                pl.BlockSpec((tile_m, dim), lambda i: (i, 0)),
                # resident weights/biases: constant block -> single buffer
                pl.BlockSpec((dim, hidden_p), lambda i: (0, 0),
                             pipeline_mode=pl.Buffered(1)),
                pl.BlockSpec((1, hidden_p), lambda i: (0, 0),
                             pipeline_mode=pl.Buffered(1)),
                pl.BlockSpec((hidden_p, dim_out_p), lambda i: (0, 0),
                             pipeline_mode=pl.Buffered(1)),
                pl.BlockSpec((1, dim_out_p), lambda i: (0, 0),
                             pipeline_mode=pl.Buffered(1)),
            ],
            out_specs=pl.BlockSpec((tile_m, dim_out_p), lambda i: (i, 0)),
        ),
        compiler_params=pltpu.CompilerParams(
            dimension_semantics=("parallel",),     # shard M tiles across TCs (v7x)
            vmem_limit_bytes=_VMEM_LIMIT,
        ),
        cost_estimate=cost,
    )(x2d, w1_p, b1_p, w2_p, b2_p)

    out = out_p[:, :dim] if dim_out_p != dim else out_p   # strip lane padding only
    return out.reshape(orig_shape)


# ------------------------------------------------------------------
# Demo / self-test
# ------------------------------------------------------------------
if __name__ == "__main__":
    dim, hidden_dim = 32, 64
    batch, seq = 2, 8

    key = jax.random.PRNGKey(0)
    kx, k1, k2, k3, k4 = jax.random.split(key, 5)
    x = jax.random.normal(kx, (batch, seq, dim), dtype=jnp.float32)

    # nn.Linear-style init, weights built directly in (in, out) layout.
    lim1 = 1.0 / (dim ** 0.5)
    lim2 = 1.0 / (hidden_dim ** 0.5)
    w1 = jax.random.uniform(k1, (dim, hidden_dim), jnp.float32, -lim1, lim1)
    b1 = jax.random.uniform(k2, (hidden_dim,), jnp.float32, -lim1, lim1)
    w2 = jax.random.uniform(k3, (hidden_dim, dim), jnp.float32, -lim2, lim2)
    b2 = jax.random.uniform(k4, (dim,), jnp.float32, -lim2, lim2)

    # One-time parameter preparation (padding + bf16 cast) outside the hot path.
    params = prepare_ffn_params(w1, b1, w2, b2)

    out = feedforward_forward(x, *params)
    out = jax.block_until_ready(out)

    # Pure-JAX reference with the same bf16 weight/activation quantization
    # (dropout p = 0.0 -> identity).
    f32 = jnp.float32
    w1_q = w1.astype(jnp.bfloat16).astype(f32)
    w2_q = w2.astype(jnp.bfloat16).astype(f32)
    x_q = x.astype(jnp.bfloat16).astype(f32)
    h_ref = _gelu_tanh(jnp.dot(x_q, w1_q) + b1)
    h_ref_q = h_ref.astype(jnp.bfloat16).astype(f32)
    ref = jnp.dot(h_ref_q, w2_q) + b2

    assert out.shape == x.shape
    assert jnp.allclose(out, ref, atol=2e-2, rtol=2e-2), "mismatch vs reference"
    print("KERNEL_OK")
</pallas_src>

<mosaic_0001>
module attributes {stable_mosaic.version = 11 : i64} {
  func.func @_ffn_kernel(%arg0: i32, %arg1: memref<8x32xf32, #tpu.memory_space<vmem>>, %arg2: memref<32x256xbf16, #tpu.memory_space<vmem>>, %arg3: memref<1x256xf32, #tpu.memory_space<vmem>>, %arg4: memref<256x256xbf16, #tpu.memory_space<vmem>>, %arg5: memref<1x256xf32, #tpu.memory_space<vmem>>, %arg6: memref<8x256xf32, #tpu.memory_space<vmem>>) attributes {dimension_semantics = [#tpu.dimension_semantics<parallel>], iteration_bounds = array<i64: 2>, scalar_prefetch = 0 : i64, scratch_operands = 0 : i64, tpu.core_type = #tpu.core_type<tc>, window_params = [{transform_indices = @transform_0, window_bounds = array<i64: 8, 32>}, {pipeline_mode = #tpu.pipeline_mode<synchronous>, transform_indices = @transform_1, window_bounds = array<i64: 32, 256>}, {pipeline_mode = #tpu.pipeline_mode<synchronous>, transform_indices = @transform_2, window_bounds = array<i64: 1, 256>}, {pipeline_mode = #tpu.pipeline_mode<synchronous>, transform_indices = @transform_3, window_bounds = array<i64: 256, 256>}, {pipeline_mode = #tpu.pipeline_mode<synchronous>, transform_indices = @transform_4, window_bounds = array<i64: 1, 256>}, {transform_indices = @transform_5, window_bounds = array<i64: 8, 256>}]} {
    %c0 = arith.constant 0 : index
    %c0_0 = arith.constant 0 : index
    %0 = vector.load %arg1[%c0, %c0_0] : memref<8x32xf32, #tpu.memory_space<vmem>>, vector<8x32xf32>
    %1 = arith.truncf %0 : vector<8x32xf32> to vector<8x32xbf16>
    %c0_1 = arith.constant 0 : index
    %c0_2 = arith.constant 0 : index
    %2 = vector.load %arg2[%c0_1, %c0_2] : memref<32x256xbf16, #tpu.memory_space<vmem>>, vector<32x256xbf16>
    %cst = arith.constant dense<0.000000e+00> : vector<8x256xf32>
    %3 = tpu.matmul %1, %2, %cst {dimension_numbers = #tpu.dot_dimension_numbers<[1], [0], [0], [1], [0, 0, 1, 1], [], []>} : vector<8x32xbf16>, vector<32x256xbf16>, vector<8x256xf32> -> vector<8x256xf32>
    %c0_3 = arith.constant 0 : index
    %c0_4 = arith.constant 0 : index
    %4 = vector.load %arg3[%c0_3, %c0_4] : memref<1x256xf32, #tpu.memory_space<vmem>>, vector<1x256xf32>
    %5 = vector.broadcast %4 : vector<1x256xf32> to vector<8x256xf32>
    %6 = arith.addf %3, %5 : vector<8x256xf32>
    %7 = arith.mulf %6, %6 : vector<8x256xf32>
    %cst_5 = arith.constant 0.0356774069 : f32
    %8 = vector.broadcast %cst_5 : f32 to vector<8x256xf32>
    %9 = arith.mulf %8, %7 : vector<8x256xf32>
    %cst_6 = arith.constant 0.797884583 : f32
    %10 = vector.broadcast %cst_6 : f32 to vector<8x256xf32>
    %11 = arith.addf %10, %9 : vector<8x256xf32>
    %12 = arith.mulf %6, %11 : vector<8x256xf32>
    %13 = math.tanh %12 : vector<8x256xf32>
    %cst_7 = arith.constant 5.000000e-01 : f32
    %14 = vector.broadcast %cst_7 : f32 to vector<8x256xf32>
    %15 = arith.mulf %14, %6 : vector<8x256xf32>
    %cst_8 = arith.constant 1.000000e+00 : f32
    %16 = vector.broadcast %cst_8 : f32 to vector<8x256xf32>
    %17 = arith.addf %16, %13 : vector<8x256xf32>
    %18 = arith.mulf %15, %17 : vector<8x256xf32>
    %19 = arith.truncf %18 : vector<8x256xf32> to vector<8x256xbf16>
    %c0_9 = arith.constant 0 : index
    %c0_10 = arith.constant 0 : index
    %20 = vector.load %arg4[%c0_9, %c0_10] : memref<256x256xbf16, #tpu.memory_space<vmem>>, vector<256x256xbf16>
    %cst_11 = arith.constant dense<0.000000e+00> : vector<8x256xf32>
    %21 = tpu.matmul %19, %20, %cst_11 {dimension_numbers = #tpu.dot_dimension_numbers<[1], [0], [0], [1], [0, 0, 1, 1], [], []>} : vector<8x256xbf16>, vector<256x256xbf16>, vector<8x256xf32> -> vector<8x256xf32>
    %c0_12 = arith.constant 0 : index
    %c0_13 = arith.constant 0 : index
    %22 = vector.load %arg5[%c0_12, %c0_13] : memref<1x256xf32, #tpu.memory_space<vmem>>, vector<1x256xf32>
    %23 = vector.broadcast %22 : vector<1x256xf32> to vector<8x256xf32>
    %24 = arith.addf %21, %23 : vector<8x256xf32>
    %c0_14 = arith.constant 0 : index
    %c0_15 = arith.constant 0 : index
    %25 = vector.load %arg6[%c0_14, %c0_15] : memref<8x256xf32, #tpu.memory_space<vmem>>, vector<8x256xf32>
    tpu.vector_store %arg6[%c0_14, %c0_15], %24 {strides = array<i32>} : memref<8x256xf32, #tpu.memory_space<vmem>>, vector<8x256xf32>,
    return
  }
  func.func @transform_0(%arg0: i32) -> (i32, i32) {
    %c0_i32 = arith.constant 0 : i32
    %c0_i32_0 = arith.constant 0 : i32
    return %arg0, %c0_i32 : i32, i32
  }
  func.func @transform_1(%arg0: i32) -> (i32, i32) {
    %c0_i32 = arith.constant 0 : i32
    %c0_i32_0 = arith.constant 0 : i32
    %c0_i32_1 = arith.constant 0 : i32
    return %c0_i32, %c0_i32_0 : i32, i32
  }
  func.func @transform_2(%arg0: i32) -> (i32, i32) {
    %c0_i32 = arith.constant 0 : i32
    %c0_i32_0 = arith.constant 0 : i32
    %c0_i32_1 = arith.constant 0 : i32
    return %c0_i32, %c0_i32_0 : i32, i32
  }
  func.func @transform_3(%arg0: i32) -> (i32, i32) {
    %c0_i32 = arith.constant 0 : i32
    %c0_i32_0 = arith.constant 0 : i32
    %c0_i32_1 = arith.constant 0 : i32
    return %c0_i32, %c0_i32_0 : i32, i32
  }
  func.func @transform_4(%arg0: i32) -> (i32, i32) {
    %c0_i32 = arith.constant 0 : i32
    %c0_i32_0 = arith.constant 0 : i32
    %c0_i32_1 = arith.constant 0 : i32
    return %c0_i32, %c0_i32_0 : i32, i32
  }
  func.func @transform_5(%arg0: i32) -> (i32, i32) {
    %c0_i32 = arith.constant 0 : i32
    %c0_i32_0 = arith.constant 0 : i32
    return %arg0, %c0_i32 : i32, i32
  }
}

</mosaic_0001>

<bundles_post_ra>
// kernel: feedforward_forward.1
= control target key start
LH: loop header
LB: loop body
LE: loop exit
PB: predicated region body
PF: predicated region fallthrough
CT: control target
= control target key end

     0   :  { %10 = vsyncpa [#allocation3], 0  ;;  %s1220_s0 = inlined_call_operand.hbm [shape: f32[16,32], index: 0, kind: input, shape index: {}]   ;;  %s1221_s1 = inlined_call_operand.hbm [shape: bf16[32,256], index: 1, kind: input, shape index: {}]   ;;  %s1222_s2 = inlined_call_operand.vmem [shape: f32[1,256], index: 2, kind: input, shape index: {}]   ;;  %s1223_s3 = inlined_call_operand.hbm [shape: bf16[256,256], index: 3, kind: input, shape index: {}]   ;;  %s1224_s4 = inlined_call_operand.vmem [shape: f32[1,256], index: 4, kind: input, shape index: {}]   ;;  %s1225_s5 = inlined_call_operand.vmem [shape: f32[16,256], index: 5, kind: output, shape index: {}]  }
   0x1   :  { %12 = vsyncpa [#allocation3 + $0x1], 0 }
   0x2   :  { %13 = vsyncpa [#allocation5], 0  ;;  %s1042_s18 = smov 0   ;;  %s1044_s19 = smov 0  }
   0x3   :  { %s1046_s20 = smov 0   ;;  %s1048_s21 = smov 0  }
   0x4 LB: > { %s1061_s22 = sadd.s32 4294967295, %s1004_s21   ;;  %p39_p0 = scmp.ne.s32.totalorder %s996_s19, %s992_s18  ;;  %s1004_s21 = sphi %s1048_s21, %s1240_s21   ;;  %s1000_s20 = sphi %s1046_s20, %s1239_s20   ;;  %s996_s19 = sphi %s1044_s19, %s1238_s19   ;;  %s992_s18 = sphi %s1042_s18, %s1237_s18  }
   0x5   : > { %p1226_p1 = scmp.eq.s32.totalorder %s1061_s22, 0  ;;  %p707_p2 = scmp.ge.s32.totalorder %s1004_s21, 1 }
   0x6   : > { %p160_p3 = scmp.lt.s32.totalorder %s1004_s21, 3  ;;  %s1006_s25 = smov [#allocation4]  }
   0x7   : > { %p1069_p4 = por %p1226_p1, %p39_p0  ;;  %s172_s26 = sshll.u32 %s1006_s25, 4  ;;  %s173_s26 = int_to_ptr.vmem [resolvable:$true] %s172_s26 }
   0x8   : > { %p1073_p5 = pnand %p707_p2, %p160_p3  ;;  %s1007_s28 = smov [#allocation6]  }
   0x9   : > { %s1229_s23 = scalar_select %p1069_p4, 1, 0 }
   0xa   : > { %s1230_s24 = scalar_select %p1073_p5, 1, 0 }
   0xb   : > { %p769_p6 = pneg %p1073_p5  ;;  %s188_s29 = sshll.u32 %s1007_s28, 4  ;;  %s1085_s29 = int_to_ptr.vmem [resolvable:$true] %s188_s29 }
   0xc   : > { %s880_s7 = scalar_lea.hbm %s1221_s1, 512 }
   0xd   : > { %p1081_p7 = pnand %p769_p6, %p1226_p1  ;;  %p881_p8 = scmp.ne.s32.totalorder %s1221_s1, %s880_s7 }
   0xe   : > { %p887_p12 = scmp.lt.u32.totalorder %s880_s7, %s1221_s1 }
   0xf   : > { %p882_p9 = pneg %p1081_p7 }
  0x11   : > { %p883_p10 = pnand %p882_p9, %p881_p8 }
  0x13   : > { %p884_p11 = pneg %p883_p10 }
  0x15   : > { %p889_p13 = pnand %p887_p12, %p884_p11 }
  0x17   : > { %892 = shalt.err (!%p889_p13)
}
  0x18   : > { %s893_s12 = scalar_lea.vmem %s173_s26, 512  ;;  %p901_p6 = scmp.lt.s32.totalorder %s173_s26, %s173_s26 }
  0x19   : > { %p894_p0 = scmp.ne.s32.totalorder %s173_s26, %s893_s12  ;;  %p902_p1 = scmp.lt.s32.totalorder %s893_s12, %s893_s12 }
  0x1b   : > { %p896_p2 = pnand %p894_p0, %p882_p9  ;;  %p903_p4 = por %p902_p1, %p901_p6 }
  0x1d   : > { %p897_p3 = pneg %p896_p2 }
  0x1f   : > { %p904_p5 = pnand %p903_p4, %p897_p3 }
  0x21   : > { %907 = shalt.err (!%p904_p5)
}
  0x22   : > { %s1008_s13 = smov 128   ;;  %s1009_s14 = smov 8  }
  0x23   : > { %772 = dma.hbm_to_vmem [thread:$0]  (!%p1081_p7), %s1221_s1, 512, %s173_s26, [#allocation5], %s1008_s13, %s1008_s13, %s1009_s14  }
  0x24   : > { %s908_s25 = scalar_lea.hbm %s1223_s3, 4096 }
  0x25   : > { %p909_p8 = scmp.ne.s32.totalorder %s1223_s3, %s908_s25  ;;  %p915_p5 = scmp.lt.u32.totalorder %s908_s25, %s1223_s3 }
  0x27   : > { %p911_p1 = pnand %p909_p8, %p882_p9 }
  0x29   : > { %p912_p4 = pneg %p911_p1 }
  0x2b   : > { %p917_p10 = pnand %p915_p5, %p912_p4 }
  0x2d   : > { %920 = shalt.err (!%p917_p10)
}
  0x2e   : > { %s921_s26 = scalar_lea.vmem %s1085_s29, 4096  ;;  %p929_p0 = scmp.lt.s32.totalorder %s1085_s29, %s1085_s29 }
  0x2f   : > { %p922_p11 = scmp.ne.s32.totalorder %s1085_s29, %s921_s26  ;;  %p930_p2 = scmp.lt.s32.totalorder %s921_s26, %s921_s26 }
  0x31   : > { %p924_p12 = pnand %p922_p11, %p882_p9  ;;  %p931_p3 = por %p930_p2, %p929_p0 }
  0x33   : > { %p925_p13 = pneg %p924_p12 }
  0x35   : > { %p932_p6 = pnand %p931_p3, %p925_p13 }
  0x37   : > { %935 = shalt.err (!%p932_p6)
}
  0x38   : > { %775 = dma.hbm_to_vmem [thread:$0]  (!%p1081_p7), %s1223_s3, 4096, %s1085_s29, [#allocation5], %s1008_s13, %s1008_s13, %s1009_s14  }
  0x39   : > { %s1135_s10 = sadd.s32 1, %s1004_s21   ;;  %s26_s11 = sadd.s32 1, %s1000_s20 }
  0x3a   : > { %s23_s27 = ssub.s32 %s1004_s21, %s1135_s10  ;;  %p33_p9 = scmp.ne.s32.totalorder %s1000_s20, %s996_s19 }
  0x3b   : > { %p24_p8 = scmp.eq.s32.totalorder %s23_s27, 0  ;;  %p34_p1 = scmp.eq.s32.totalorder %s1004_s21, 0 }
  0x3c   : > { %p782_p4 = scmp.lt.s32.totalorder %s1004_s21, 2  ;;  %s205_s12 = sand.u32 1, %s1000_s20  }
  0x3d   : > { %s1146_s15 = scalar_select %p24_p8, %s1000_s20, %s26_s11  }
  0x3e   : > { %p35_p5 = por %p34_p1, %p33_p9  ;;  %s711_s16 = sshll.u32 %s205_s12, 3 }
  0x3f   : > { %s712_s17 = sshll.u32 %s1004_s21, 7  ;;  %s209_s29 = scalar_lea.vmem [#allocation2], %s711_s16 }
  0x40   : > { %s1152_s28 = scalar_lea.hbm %s1220_s0, %s712_s17  ;;  %s216_s13 = sshll.u32 %s209_s29, 4  ;;  %s1158_s13 = int_to_ptr.vmem [resolvable:$true] %s216_s13 }
  0x41   : > { %p1154_p7 = pnand %p782_p4, %p35_p5  ;;  %s206_s21 = scalar_lea.sflag [#allocation3], %s205_s12 }
  0x42   : > { %s936_s30 = scalar_lea.hbm %s1152_s28, 128  ;;  %s941_s26 = scalar_lea.hbm %s1220_s0, 256 }
  0x43   : > { %p937_p10 = scmp.ne.s32.totalorder %s1152_s28, %s936_s30  ;;  %p938_p11 = pneg %p1154_p7 }
  0x44   : > { %p942_p0 = scmp.lt.u32.totalorder %s1152_s28, %s1220_s0  ;;  %p943_p2 = scmp.lt.u32.totalorder %s941_s26, %s936_s30 }
  0x45   : > { %p939_p12 = pnand %p938_p11, %p937_p10  ;;  %p945_p6 = scmp.lt.u32.totalorder %s936_s30, %s1152_s28 }
  0x46   : > { %p944_p3 = por %p943_p2, %p942_p0 }
  0x47   : > { %p940_p13 = pneg %p939_p12 }
  0x48   : > { %p946_p9 = por %p945_p6, %p944_p3 }
  0x4a   : > { %p947_p8 = pnand %p946_p9, %p940_p13 }
  0x4c   : > { %950 = shalt.err (!%p947_p8)
}
  0x4d   : > { %s951_s11 = scalar_lea.vmem %s1158_s13, 128  ;;  %s1010_s27 = smov [#allocation2]  }
  0x4e   : > { %p952_p1 = scmp.ne.s32.totalorder %s1158_s13, %s951_s11  ;;  %s956_s12 = sshll.u32 %s1010_s27, 4  ;;  %s957_s12 = int_to_ptr.vmem [resolvable:$false] %s956_s12 }
  0x4f   : > { %s958_s16 = scalar_lea.vmem %s957_s12, 256  ;;  %p959_p10 = scmp.lt.s32.totalorder %s1158_s13, %s957_s12 }
  0x50   : > { %p954_p4 = pnand %p952_p1, %p938_p11  ;;  %p960_p12 = scmp.lt.s32.totalorder %s958_s16, %s951_s11 }
  0x52   : > { %p955_p5 = pneg %p954_p4  ;;  %p961_p0 = por %p960_p12, %p959_p10 }
  0x54   : > { %p962_p2 = pnand %p961_p0, %p955_p5 }
  0x56   : > { %965 = shalt.err (!%p962_p2)
}
  0x57   : > { %779 = dma.hbm_to_vmem [thread:$0]  (!%p1154_p7), %s1152_s28, 128, %s1158_s13, %s206_s21  }
  0x58   : > { %p1233_p13 = scmp.ne.s32.totalorder %s1230_s24, 0 }
  0x59   : > { %s227_s17 = sand.u32 (!%p1233_p13), 1, %s996_s19   ;;  %p1234_p11 = scmp.ne.s32.totalorder (!%p1233_p13), %s1229_s23, 0 }
  0x5a   : > { %225 = sbr.rel (%p1233_p13) target bundleno = 567 (0x237), region = 40  ;;  %s714_s18 = sshll.u32 (!%p1233_p13), %s227_s17, 3 }
  0x5b   : > { %s228_s25 = scalar_lea.sflag (!%p1233_p13), [#allocation3], %s227_s17  ;;  %s231_s29 = scalar_lea.vmem (!%p1233_p13), [#allocation2], %s714_s18 }
  0x61   : > { %983 = dma.done.wait (%p1234_p11), %s228_s25, 128  }
  0x62   : > { %985 = vsyncadd (%p1234_p11), %s228_s25, 4294967168  ;;  %p1235_p3 = scmp.eq.s32.totalorder %s1061_s22, 0 }
  0x64   : > { %987 = dma.done.wait (%p1235_p3), [#allocation5], 4608   ;;  %p1236_p6 = pmov %p1235_p3 }
  0x65   : > { %v1011_v0 = vmov 0   ;;  %v822_v1 = vld [vmem:[#allocation4 + $0x4] ss:$8 sps:$4 sm:$0xff]   ;;  %v824_v2 = vld [vmem:[#allocation4] ss:$8 sps:$4 sm:$0xff]   ;;  %v272_v5 = vld [vmem:[%s231_s29] sm:$0xff]  ;;  %v280_v39 = vlaneseq }
  0x66   : > { %989 = vsyncadd (%p1236_p6), [#allocation5], 4294962688  ;;  %346 = vmatprep.mubr.bf16.mxu0 %v1011_v0  ;;  %314 = vmatprep.subr.bf16.mxu0 %v822_v1  ;;  %v825_v3 = vld [vmem:[#allocation4 + $0x14] ss:$8 sps:$4 sm:$0xff]   ;;  %v827_v4 = vld [vmem:[#allocation4 + $0x10] ss:$8 sps:$4 sm:$0xff]   ;;  %v273_v9 = vpack.c.bf16 %v272_v5, %v272_v5 }
  0x67   : > { %315 = vmatpush1.bf16.msra.mxu0 %v824_v2  ;;  %v828_v6 = vld [vmem:[#allocation6 + $0x4] ss:$8 sps:$4 sm:$0xff]   ;;  %v830_v7 = vld [vmem:[#allocation6] ss:$8 sps:$4 sm:$0xff]   ;;  %v831_v8 = vld [vmem:[#allocation6 + $0x14] ss:$8 sps:$4 sm:$0xff]  }
  0x68   : > { %316 = vmatprep.subr.bf16.mxu0 %v825_v3  ;;  %577 = vmatprep.subr.bf16.mxu1 %v828_v6  ;;  %v833_v10 = vld [vmem:[#allocation6 + $0x10] ss:$8 sps:$4 sm:$0xff]   ;;  %vm310_vm0 = vcmask 261120   ;;  %v834_v11 = vld [vmem:[#allocation6 + $0x24] ss:$8 sps:$4 sm:$0xff]   ;;  %v281_v40 = vshrl.u32 %v280_v39, 7 }
  0x69   : > { %578 = vmatpush1.bf16.msra.mxu1 %v830_v7  ;;  %v836_v12 = vld [vmem:[#allocation6 + $0x20] ss:$8 sps:$4 sm:$0xff]   ;;  %v837_v13 = vld [vmem:[#allocation6 + $0x34] ss:$8 sps:$4 sm:$0xff]   ;;  %v839_v14 = vld [vmem:[#allocation6 + $0x30] ss:$8 sps:$4 sm:$0xff]  }
  0x6a   : > { %579 = vmatprep.subr.bf16.mxu1 %v831_v8  ;;  %v840_v15 = vld [vmem:[#allocation6 + $0x44] ss:$8 sps:$4 sm:$0xff]   ;;  %v842_v16 = vld [vmem:[#allocation6 + $0x40] ss:$8 sps:$4 sm:$0xff]   ;;  %v843_v17 = vld [vmem:[#allocation6 + $0x54] ss:$8 sps:$4 sm:$0xff]  }
  0x6b   : > { %317 = vmatpush1.bf16.msra.mxu0 %v827_v4  ;;  %v845_v18 = vld [vmem:[#allocation6 + $0x50] ss:$8 sps:$4 sm:$0xff]   ;;  %v846_v19 = vld [vmem:[#allocation6 + $0x64] ss:$8 sps:$4 sm:$0xff]   ;;  %v848_v20 = vld [vmem:[#allocation6 + $0x60] ss:$8 sps:$4 sm:$0xff]  }
  0x6c   : > { %v849_v21 = vld [vmem:[#allocation6 + $0x74] ss:$8 sps:$4 sm:$0xff]   ;;  %v851_v22 = vld [vmem:[#allocation6 + $0x70] ss:$8 sps:$4 sm:$0xff]   ;;  %v852_v23 = vld [vmem:[#allocation6 + $0x84] ss:$8 sps:$4 sm:$0xff]  }
  0x6d   : > { %580 = vmatpush1.bf16.msra.mxu1 %v833_v10  ;;  %v854_v24 = vld [vmem:[#allocation6 + $0x80] ss:$8 sps:$4 sm:$0xff]   ;;  %v855_v25 = vld [vmem:[#allocation6 + $0x94] ss:$8 sps:$4 sm:$0xff]   ;;  %v857_v26 = vld [vmem:[#allocation6 + $0x90] ss:$8 sps:$4 sm:$0xff]  }
  0x6e   : > { %723 = vmatmul.mubr.msk.bf16.vlgmr.msra.gmra.mrb[0].mxu0 %vm310_vm0, %v273_v9  ;;  %581 = vmatprep.subr.bf16.mxu1 %v834_v11  ;;  %v858_v27 = vld [vmem:[#allocation6 + $0xa4] ss:$8 sps:$4 sm:$0xff]   ;;  %v860_v28 = vld [vmem:[#allocation6 + $0xa0] ss:$8 sps:$4 sm:$0xff]   ;;  %v861_v29 = vld [vmem:[#allocation6 + $0xb4] ss:$8 sps:$4 sm:$0xff]  }
  0x6f   : > { %v863_v30 = vld [vmem:[#allocation6 + $0xb0] ss:$8 sps:$4 sm:$0xff]   ;;  %v864_v31 = vld [vmem:[#allocation6 + $0xc4] ss:$8 sps:$4 sm:$0xff]   ;;  %v866_v32 = vld [vmem:[#allocation6 + $0xc0] ss:$8 sps:$4 sm:$0xff]  }
  0x70   : > { %v867_v33 = vld [vmem:[#allocation6 + $0xd4] ss:$8 sps:$4 sm:$0xff]   ;;  %v869_v34 = vld [vmem:[#allocation6 + $0xd0] ss:$8 sps:$4 sm:$0xff]   ;;  %v870_v35 = vld [vmem:[#allocation6 + $0xe4] ss:$8 sps:$4 sm:$0xff]  }
  0x71   : > { %582 = vmatpush1.bf16.msra.mxu1 %v836_v12  ;;  %v872_v36 = vld [vmem:[#allocation6 + $0xe0] ss:$8 sps:$4 sm:$0xff]   ;;  %v873_v37 = vld [vmem:[#allocation6 + $0xf4] ss:$8 sps:$4 sm:$0xff]   ;;  %v875_v38 = vld [vmem:[#allocation6 + $0xf0] ss:$8 sps:$4 sm:$0xff]  }
  0x72   : > { %583 = vmatprep.subr.bf16.mxu1 %v837_v13  ;;  %v282_v41 = vsub.s32 0, %v281_v40  ;;  %v278_v42 = vld [vmem:[%s1222_s2] sm:$0x3]  ;;  %v286_v43 = vsub.s32 1, %v281_v40  ;;  %p266_p7 = scmp.lt.s32.totalorder %s1061_s22, 1 }
  0x73   : > { %v405_v6 = vld [vmem:[%s1224_s4] sm:$0x3] }
  0x74   : > { %v283_v44 = vrot.slane %v278_v42, %v282_v41  ;;  %v287_v45 = vrot.slane %v278_v42, %v286_v43  ;;  %s1242_s22 = smov (!%p266_p7, %s1061_s22), 1  ;;  %v410_v7 = vrot.slane %v405_v6, %v282_v41  ;;  %v414_v8 = vrot.slane %v405_v6, %v286_v43 }
  0x75   : > { %584 = vmatpush1.bf16.msra.mxu1 %v839_v14  ;;  %s758_s14 = sshll.u32 %s1242_s22, 4 }
  0x76   : > { %585 = vmatprep.subr.bf16.mxu1 %v840_v15  ;;  %s270_s6 = scalar_lea.vmem %s1225_s5, %s758_s14 }
  0x79   : > { %586 = vmatpush1.bf16.msra.mxu1 %v842_v16 }
  0x7a   : > { %587 = vmatprep.subr.bf16.mxu1 %v843_v17 }
  0x7d   : > { %588 = vmatpush1.bf16.msra.mxu1 %v845_v18 }
  0x7e   : > { %589 = vmatprep.subr.bf16.mxu1 %v846_v19 }
  0x81   : > { %590 = vmatpush1.bf16.msra.mxu1 %v848_v20 }
  0x82   : > { %591 = vmatprep.subr.bf16.mxu1 %v849_v21 }
  0x85   : > { %592 = vmatpush1.bf16.msra.mxu1 %v851_v22 }
  0x86   : > { %593 = vmatprep.subr.bf16.mxu1 %v852_v23 }
  0x89   : > { %594 = vmatpush1.bf16.msra.mxu1 %v854_v24 }
  0x8a   : > { %595 = vmatprep.subr.bf16.mxu1 %v855_v25 }
  0x8d   : > { %596 = vmatpush1.bf16.msra.mxu1 %v857_v26 }
  0x8e   : > { %597 = vmatprep.subr.bf16.mxu1 %v858_v27 }
  0x91   : > { %598 = vmatpush1.bf16.msra.mxu1 %v860_v28 }
  0x92   : > { %599 = vmatprep.subr.bf16.mxu1 %v861_v29 }
  0x95   : > { %600 = vmatpush1.bf16.msra.mxu1 %v863_v30 }
  0x96   : > { %601 = vmatprep.subr.bf16.mxu1 %v864_v31 }
  0x99   : > { %602 = vmatpush1.bf16.msra.mxu1 %v866_v32 }
  0x9a   : > { %603 = vmatprep.subr.bf16.mxu1 %v867_v33 }
  0x9d   : > { %604 = vmatpush1.bf16.msra.mxu1 %v869_v34 }
  0x9e   : > { %605 = vmatprep.subr.bf16.mxu1 %v870_v35 }
  0xa1   : > { %606 = vmatpush1.bf16.msra.mxu1 %v872_v36 }
  0xa2   : > { %607 = vmatprep.subr.bf16.mxu1 %v873_v37 }
  0xa5   : > { %608 = vmatpush1.bf16.msra.mxu1 %v875_v38 }
 0x141   : > { %v348_v46 = vpop.f32.mrb[0].mxu0 }
 0x142   : > { %v349_v47 = vadd.f32 %v348_v46, %v283_v44  ;;  %v350_v48 = vpop.f32.mrb[1].mxu0 }
 0x143   : > { %v351_v49 = vadd.f32 %v350_v48, %v287_v45  ;;  %v352_v50 = vpop.f32.mrb[2].mxu0 }
 0x144   : > { %v355_v51 = vmul.f32 %v349_v47, %v349_v47  ;;  %v353_v52 = vpop.f32.mrb[3].mxu0  ;;  %v365_v62 = vmul.f32 0.5, %v349_v47 }
 0x145   : > { %v356_v53 = vmul.f32 %v351_v49, %v351_v49  ;;  %v366_v0 = vmul.f32 0.5, %v351_v49 }
 0x146   : > { %v357_v54 = vmul.f32 0.035677407, %v355_v51 }
 0x147   : > { %v358_v55 = vmul.f32 0.035677407, %v356_v53 }
 0x148   : > { %v359_v56 = vadd.f32 0.7978846, %v357_v54 }
 0x149   : > { %v360_v57 = vadd.f32 0.7978846, %v358_v55 }
 0x14a   : > { %v361_v58 = vmul.f32 %v359_v56, %v349_v47 }
 0x14b   : > { %v362_v59 = vmul.f32 %v360_v57, %v351_v49 }
 0x14c   : > { %876 = vtanh.f32 %v361_v58 }
 0x14d   : > { %878 = vtanh.f32 %v362_v59 }
 0x156   : > { %v877_v60 = vpop.eup %876 }
 0x157   : > { %v879_v61 = vpop.eup %878  ;;  %v367_v63 = vadd.f32 1.0, %v877_v60 }
 0x158   : > { %v368_v1 = vadd.f32 1.0, %v879_v61 }
 0x159   : > { %v369_v2 = vmul.f32 %v367_v63, %v365_v62 }
 0x15a   : > { %v370_v3 = vmul.f32 %v368_v1, %v366_v0 }
 0x15b   : > { %v371_v5 = vpack.c.bf16 %v369_v2, %v369_v2 }
 0x15c   : > { %v372_v4 = vpack.c.bf16 %v370_v3, %v370_v3 }
 0x15e   : > { %609 = vmatprep.mubr.bf16.mxu1 %v372_v4 }
 0x15f   : > { %610 = vmatmul.mubr.bf16.vlgmr.msra.gmra.mrb[0].mxu1 %v371_v5 }
 0x232   : > { %v611_v9 = vpop.f32.mrb[0].mxu1 }
 0x233   : > { %v612_v10 = vadd.f32 %v611_v9, %v410_v7  ;;  %v613_v11 = vpop.f32.mrb[1].mxu1 }
 0x234   : > { %v614_v12 = vadd.f32 %v613_v11, %v414_v8  ;;  %v615_v13 = vpop.f32.mrb[2].mxu1 }
 0x235   : > { %618 = vst [vmem:[%s270_s6] sm:$0xff] %v612_v10  ;;  %v616_v14 = vpop.f32.mrb[3].mxu1 }
 0x236   : > { %619 = vst [vmem:[%s270_s6 + $0x8] sm:$0xff] %v614_v12 }
 0x237 PF: > { %p16_p9 = scmp.ge.s32.totalorder %s1135_s10, 4   ;;  %s1237_s18 = smov %s996_s19 }
 0x238   : > { %s1238_s19 = smov %s1000_s20  ;;  %s1239_s20 = smov %s1146_s15 }
 0x239   : > { %s1240_s21 = smov %s1135_s10  ;;  %18 = sbr.rel (!%p16_p9) target bundleno = 4 (0x4), region = 88 }
 0x240   :  { %641 = vsyncpa [#allocation3], 1 }
 0x241   :  { %643 = vsyncpa [#allocation3 + $0x1], 1 }
 0x242   :  { %644 = vsyncpa [#allocation5], 1 }

</bundles_post_ra>
